<compile_context>
chip_gen: v6e
topology: v6e:2x2x1
jax: 0.10.0
libtpu: 0.0.40
codegen_flags: <defaults>
</compile_context>

<pallas_src>
import functools

import jax
import jax.numpy as jnp
from jax.experimental import pallas as pl
from jax.experimental.pallas import tpu as pltpu

_LANE = 128
_MAX_BLOCK_ROWS = 1024  # (1024, 128) f32 block = 512 KiB


def _corruption_kernel(seed_ref, x_ref, o_ref, *, threshold):
    """Zero each element independently with probability ~corrupt_p."""
    tr, lanes = x_ref.shape  # static block shape

    # Global element index for every entry of this block (tiling-invariant).
    row = jax.lax.broadcasted_iota(jnp.int32, (tr, lanes), 0).astype(jnp.uint32)
    col = jax.lax.broadcasted_iota(jnp.int32, (tr, lanes), 1).astype(jnp.uint32)
    row_off = (pl.program_id(0) * tr).astype(jnp.uint32)
    idx = (row + row_off) * jnp.uint32(lanes) + col

    seed = seed_ref[0].astype(jnp.uint32)

    # Counter-based hash: mix(seed, idx) then murmur3 fmix32 finalizer.
    h = idx * jnp.uint32(0x9E3779B1) + seed * jnp.uint32(0x85EBCA6B) + jnp.uint32(1)
    h = h ^ (h >> 16)
    h = h * jnp.uint32(0x85EBCA6B)
    h = h ^ (h >> 13)
    h = h * jnp.uint32(0xC2B2AE35)
    h = h ^ (h >> 16)

    # P(keep) = 1 - corrupt_p (to within 2^-32); matches `uniform > p`.
    keep = h > jnp.uint32(threshold)
    x = x_ref[...]
    o_ref[...] = jnp.where(keep, x, jnp.zeros_like(x))


def corruption_layer(feature, seed, corrupt_p=0.1):
    """Apply a random corruption (keep w.p. 1 - corrupt_p) mask to `feature`."""
    orig_shape = feature.shape
    orig_dtype = feature.dtype

    flat = feature.reshape(-1)
    n = flat.shape[0]
    pad = (-n) % _LANE
    if pad:  # typical CNN feature maps have C*H*W % 128 == 0 -> no pad at all
        flat = jnp.pad(flat, (0, pad))
    x2d = flat.reshape(-1, _LANE)  # lane-dense 2-D slab
    rows = x2d.shape[0]

    # Largest lane-dense block that fits comfortably; full extent for small inputs.
    block_rows = _MAX_BLOCK_ROWS if rows >= _MAX_BLOCK_ROWS else rows
    grid = (pl.cdiv(rows, block_rows),)

    threshold = min(max(int(round(float(corrupt_p) * 4294967296.0)), 0), 4294967295)
    seed_arr = jnp.asarray([seed], dtype=jnp.int32)

    out2d = pl.pallas_call(
        functools.partial(_corruption_kernel, threshold=threshold),
        out_shape=jax.ShapeDtypeStruct(x2d.shape, orig_dtype),
        grid=grid,
        in_specs=[
            pl.BlockSpec(memory_space=pltpu.SMEM),                 # scalar seed
            pl.BlockSpec((block_rows, _LANE), lambda i: (i, 0)),   # feature tile
        ],
        out_specs=pl.BlockSpec((block_rows, _LANE), lambda i: (i, 0)),
        compiler_params=pltpu.CompilerParams(
            dimension_semantics=("parallel",)),
    )(seed_arr, x2d)

    out_flat = out2d.reshape(-1)
    if pad:
        out_flat = out_flat[:n]
    return out_flat.reshape(orig_shape)


if __name__ == "__main__":
    key = jax.random.PRNGKey(0)
    # Small NCHW input consistent with a CNN feature map.
    x = jax.random.normal(key, (2, 4, 16, 16), dtype=jnp.float32)

    out = corruption_layer(x, seed=0, corrupt_p=0.1)
    out = jax.block_until_ready(out)

    # Sanity checks: shape/dtype preserved; each element is either the original
    # value or exactly zero; some (but not all) elements were corrupted.
    assert out.shape == x.shape and out.dtype == x.dtype
    zero_or_same = jnp.logical_or(out == 0.0, out == x)
    assert bool(jnp.all(zero_or_same))
    n_zero = int(jnp.sum(out == 0.0))
    assert 0 < n_zero < x.size

    print("KERNEL_OK")
</pallas_src>

<mosaic_0001>
module attributes {stable_mosaic.version = 11 : i64} {
  func.func @_corruption_kernel(%arg0: i32, %arg1: memref<1xi32, #tpu.memory_space<smem>>, %arg2: memref<16x128xf32, #tpu.memory_space<vmem>>, %arg3: memref<16x128xf32, #tpu.memory_space<vmem>>) attributes {dimension_semantics = [#tpu.dimension_semantics<parallel>], iteration_bounds = array<i64: 1>, scalar_prefetch = 0 : i64, scratch_operands = 0 : i64, tpu.core_type = #tpu.core_type<tc>, window_params = [{transform_indices = @transform_0, window_bounds = array<i64: 1>}, {transform_indices = @transform_1, window_bounds = array<i64: 16, 128>}, {transform_indices = @transform_2, window_bounds = array<i64: 16, 128>}]} {
    %0 = tpu.iota {dimensions = array<i32: 0>} : vector<16x128xi32>
    %1 = tpu.iota {dimensions = array<i32: 1>} : vector<16x128xi32>
    %c16_i32 = arith.constant 16 : i32
    %2 = arith.muli %arg0, %c16_i32 : i32
    %3 = vector.broadcast %2 : i32 to vector<16x128xi32>
    %4 = arith.addi %0, %3 : vector<16x128xi32>
    %c128_i32 = arith.constant 128 : i32
    %5 = vector.broadcast %c128_i32 : i32 to vector<16x128xi32>
    %6 = arith.muli %4, %5 : vector<16x128xi32>
    %7 = arith.addi %6, %1 : vector<16x128xi32>
    %c0 = arith.constant 0 : index
    %8 = memref.load %arg1[%c0] : memref<1xi32, #tpu.memory_space<smem>>
    %c-1640531535_i32 = arith.constant -1640531535 : i32
    %9 = vector.broadcast %c-1640531535_i32 : i32 to vector<16x128xi32>
    %10 = arith.muli %7, %9 : vector<16x128xi32>
    %c-2048144789_i32 = arith.constant -2048144789 : i32
    %11 = arith.muli %8, %c-2048144789_i32 : i32
    %12 = vector.broadcast %11 : i32 to vector<16x128xi32>
    %13 = arith.addi %10, %12 : vector<16x128xi32>
    %c1_i32 = arith.constant 1 : i32
    %14 = vector.broadcast %c1_i32 : i32 to vector<16x128xi32>
    %15 = arith.addi %13, %14 : vector<16x128xi32>
    %c16_i32_0 = arith.constant 16 : i32
    %16 = vector.broadcast %c16_i32_0 : i32 to vector<16x128xi32>
    %17 = arith.shrui %15, %16 : vector<16x128xi32>
    %18 = arith.xori %15, %17 : vector<16x128xi32>
    %c-2048144789_i32_1 = arith.constant -2048144789 : i32
    %19 = vector.broadcast %c-2048144789_i32_1 : i32 to vector<16x128xi32>
    %20 = arith.muli %18, %19 : vector<16x128xi32>
    %c13_i32 = arith.constant 13 : i32
    %21 = vector.broadcast %c13_i32 : i32 to vector<16x128xi32>
    %22 = arith.shrui %20, %21 : vector<16x128xi32>
    %23 = arith.xori %20, %22 : vector<16x128xi32>
    %c-1028477387_i32 = arith.constant -1028477387 : i32
    %24 = vector.broadcast %c-1028477387_i32 : i32 to vector<16x128xi32>
    %25 = arith.muli %23, %24 : vector<16x128xi32>
    %c16_i32_2 = arith.constant 16 : i32
    %26 = vector.broadcast %c16_i32_2 : i32 to vector<16x128xi32>
    %27 = arith.shrui %25, %26 : vector<16x128xi32>
    %28 = arith.xori %25, %27 : vector<16x128xi32>
    %c429496730_i32 = arith.constant 429496730 : i32
    %29 = vector.broadcast %c429496730_i32 : i32 to vector<16x128xi32>
    %30 = arith.cmpi ugt, %28, %29 : vector<16x128xi32>
    %c0_3 = arith.constant 0 : index
    %c0_4 = arith.constant 0 : index
    %31 = vector.load %arg2[%c0_3, %c0_4] : memref<16x128xf32, #tpu.memory_space<vmem>>, vector<16x128xf32>
    %cst = arith.constant 0.000000e+00 : f32
    %32 = vector.broadcast %cst : f32 to vector<16x128xf32>
    %33 = arith.select %30, %31, %32 : vector<16x128xi1>, vector<16x128xf32>
    %c0_5 = arith.constant 0 : index
    %c0_6 = arith.constant 0 : index
    %34 = vector.load %arg3[%c0_5, %c0_6] : memref<16x128xf32, #tpu.memory_space<vmem>>, vector<16x128xf32>
    tpu.vector_store %arg3[%c0_5, %c0_6], %33 {strides = array<i32>} : memref<16x128xf32, #tpu.memory_space<vmem>>, vector<16x128xf32>,
    return
  }
  func.func @transform_0(%arg0: i32) -> i32 {
    %c0_i32 = arith.constant 0 : i32
    %c0_i32_0 = arith.constant 0 : i32
    return %c0_i32 : i32
  }
  func.func @transform_1(%arg0: i32) -> (i32, i32) {
    %c0_i32 = arith.constant 0 : i32
    %c0_i32_0 = arith.constant 0 : i32
    return %arg0, %c0_i32 : i32, i32
  }
  func.func @transform_2(%arg0: i32) -> (i32, i32) {
    %c0_i32 = arith.constant 0 : i32
    %c0_i32_0 = arith.constant 0 : i32
    return %arg0, %c0_i32 : i32, i32
  }
}

</mosaic_0001>

<bundles_post_ra>
// kernel: tpu_custom_call.1
= control target key start
LH: loop header
LB: loop body
LE: loop exit
PB: predicated region body
PF: predicated region fallthrough
CT: control target
= control target key end

     0   :  { %8 = vsyncpa [#allocation4], 0  ;;  %s172_s0 = inlined_call_operand.<no memory space> [shape: s32[1], index: 0, kind: input, shape index: {}]   ;;  %s173_s1 = inlined_call_operand.hbm [shape: f32[16,128], index: 1, kind: input, shape index: {}]   ;;  %s174_s2 = inlined_call_operand.hbm [shape: f32[16,128], index: 2, kind: output, shape index: {}]  }
   0x1   :  { %9 = vsyncpa [#allocation5], 0  ;;  %s138_s9 = smov [#allocation3]  }
   0x2   :  { %s17_s10 = sshll.u32 %s138_s9, 4  ;;  %s18_s10 = int_to_ptr.vmem [resolvable:$true] %s17_s10 }
   0x3   :  { %s102_s11 = scalar_lea.vmem %s18_s10, 256  ;;  %p107_p1 = scmp.lt.s32.totalorder %s18_s10, %s18_s10 }
   0x4   :  { %p103_p0 = scmp.ne.s32.totalorder %s18_s10, %s102_s11  ;;  %p108_p2 = scmp.lt.s32.totalorder %s102_s11, %s102_s11 }
   0x6   :  { %p109_p3 = por %p108_p2, %p107_p1 }
   0x8   :  { %p110_p4 = pnand %p109_p3, %p103_p0 }
   0xa   :  { %113 = shalt.err (!%p110_p4)
}
   0xb   :  { %s139_s12 = smov 128   ;;  %s140_s13 = smov 8  }
   0xc   :  { %23 = dma.hbm_to_vmem [thread:$0]  %s173_s1, 256, %s18_s10, [#allocation4], %s139_s12, %s139_s12, %s140_s13  }
   0xd   :  { %134 = dma.done.wait [#allocation4], 256  }
   0xe   :  { %135 = vsyncadd [#allocation4], 4294967040  ;;  %v27_v0 = vlaneseq  ;;  %s43_s18 = smul.u32 2246822507, %s172_s0  ;;  %v67_v29 = vld [vmem:[#allocation3] sm:$0xff]  ;;  %s141_s0 = smov [#allocation6]  }
   0xf   :  { %s78_s1 = sshll.u32 %s141_s0, 4  ;;  %v68_v32 = vld [vmem:[#allocation3 + $0x8] sm:$0xff]  ;;  %s79_s1 = int_to_ptr.vmem [resolvable:$true] %s78_s1 }
  0x10   :  { %v28_v1 = vshrl.u32 %v27_v0, 7  ;;  %v31_v2 = vand.u32 127, %v27_v0  ;;  %v44_v7 = vstv %s43_s18  ;;  %s114_s19 = scalar_lea.vmem %s79_s1, 256  ;;  %p119_p6 = scmp.lt.s32.totalorder %s79_s1, %s79_s1 }
  0x11   :  { %p115_p5 = scmp.ne.s32.totalorder %s79_s1, %s114_s19  ;;  %p120_p7 = scmp.lt.s32.totalorder %s114_s19, %s114_s19 }
  0x12   :  { %v36_v3 = vmul.u32 128, %v28_v1  ;;  %v29_v4 = vadd.s32 8, %v28_v1 }
  0x13   :  { %p121_p8 = por %p120_p7, %p119_p6 }
  0x14   :  { %v38_v5 = vadd.s32 %v36_v3, %v31_v2  ;;  %v37_v6 = vmul.u32 128, %v29_v4 }
  0x15   :  { %p122_p9 = pnand %p121_p8, %p115_p5 }
  0x16   :  { %v41_v8 = vmul.u32 2654435761, %v38_v5  ;;  %v39_v9 = vadd.s32 %v37_v6, %v31_v2 }
  0x18   :  { %v45_v10 = vadd.s32 %v44_v7, %v41_v8  ;;  %v42_v11 = vmul.u32 2654435761, %v39_v9 }
  0x1a   :  { %v47_v12 = vadd.s32 1, %v45_v10  ;;  %v46_v13 = vadd.s32 %v44_v7, %v42_v11 }
  0x1c   :  { %v49_v14 = vshrl.u32 %v47_v12, 16  ;;  %v48_v15 = vadd.s32 1, %v46_v13 }
  0x1e   :  { %v51_v16 = vxor.u32 %v49_v14, %v47_v12  ;;  %v50_v17 = vshrl.u32 %v48_v15, 16 }
  0x20   :  { %v53_v18 = vmul.u32 2246822507, %v51_v16  ;;  %v52_v19 = vxor.u32 %v50_v17, %v48_v15 }
  0x22   :  { %v55_v20 = vshrl.u32 %v53_v18, 13  ;;  %v54_v21 = vmul.u32 2246822507, %v52_v19 }
  0x24   :  { %v57_v22 = vxor.u32 %v55_v20, %v53_v18  ;;  %v56_v23 = vshrl.u32 %v54_v21, 13 }
  0x26   :  { %v59_v24 = vmul.u32 3266489909, %v57_v22  ;;  %v58_v25 = vxor.u32 %v56_v23, %v54_v21 }
  0x28   :  { %v61_v26 = vshrl.u32 %v59_v24, 16  ;;  %v60_v27 = vmul.u32 3266489909, %v58_v25 }
  0x2a   :  { %v63_v28 = vxor.u32 %v61_v26, %v59_v24  ;;  %v62_v30 = vshrl.u32 %v60_v27, 16 }
  0x2c   :  { %vm65_vm0 = vcmp.gt.u32.totalorder %v63_v28, 429496730  ;;  %v64_v31 = vxor.u32 %v62_v30, %v60_v27 }
  0x2d   :  { %v69_v33 = vsel %vm65_vm0, %v67_v29, 0.0 }
  0x2e   :  { %71 = vst [vmem:[#allocation6] sm:$0xff] %v69_v33  ;;  %vm66_vm1 = vcmp.gt.u32.totalorder %v64_v31, 429496730 }
  0x2f   :  { %v70_v34 = vsel %vm66_vm1, %v68_v32, 0.0 }
  0x30   :  { %72 = vst [vmem:[#allocation6 + $0x8] sm:$0xff] %v70_v34 }
  0x31   :  { %125 = shalt.err (!%p122_p9)
}
  0x32   :  { %84 = dma.vmem_to_hbm [thread:$0]  %s79_s1, 256, %s174_s2, [#allocation5], %s139_s12, %s139_s12, %s140_s13  }
  0x33   :  { %136 = dma.done.wait [#allocation5], 256  }
  0x34   :  { %137 = vsyncadd [#allocation5], 4294967040 }
  0x35   :  { %88 = vsyncpa [#allocation4], 1 }
  0x36   :  { %89 = vsyncpa [#allocation5], 1 }

</bundles_post_ra>
